<compile_context>
chip_gen: v5e
topology: v5e:2x2
jax: 0.10.0
libtpu: 0.0.40
codegen_flags: <defaults>
</compile_context>

<pallas_src>
import functools

import numpy as np
import jax
import jax.numpy as jnp
from jax import lax
from jax.experimental import pallas as pl
from jax.experimental.pallas import tpu as pltpu


# ----------------------------------------------------------------------------
# Fused kernel: W_q -> Conv1d('same') over all heads -> fused (F.T, W_o)
# projection -> LN1 -> FFN -> LN2, plus the max-pooled G head.
# One grid step processes BT complete batch elements (BT*L rows).
# ----------------------------------------------------------------------------
def _act_block_kernel(q_ref, wq_ref, bq_ref, wk_ref, cbt_ref, w3_ref, bo_ref,
                      w1_ref, b1_ref, w2_ref, b2_ref,
                      g1_ref, be1_ref, g2_ref, be2_ref,
                      out_ref, *rest, n, l, pad_l, need_g):
    if need_g:
        g_out_ref, qpad_ref = rest
    else:
        (qpad_ref,) = rest

    BT, L, d = q_ref.shape
    hid = wq_ref.shape[1]
    hm = wk_ref.shape[2]                      # h * m
    R = BT * L
    pad_r = (n - 1) - pad_l
    eps = 1e-5

    q2 = q_ref[...].reshape(R, d)

    # ---- Multihead.W_q ------------------------------------------------------
    qlin = jnp.dot(q2, wq_ref[...],
                   preferred_element_type=jnp.float32) + bq_ref[...]

    # ---- Conv1d(padding='same') halo handled in VMEM (no HBM pad) ----------
    if pad_l > 0:
        qpad_ref[:, :pad_l, :] = jnp.zeros((BT, pad_l, hid), jnp.float32)
    if pad_r > 0:
        qpad_ref[:, pad_l + L:, :] = jnp.zeros((BT, pad_r, hid), jnp.float32)
    qpad_ref[:, pad_l:pad_l + L, :] = qlin.reshape(BT, L, hid)

    # ---- conv over ALL heads at once: n shifted matmuls against block-
    # diagonal per-tap weights (K = hid per MXU push, heads batched). ---------
    acc = jnp.broadcast_to(cbt_ref[...], (R, hm)).astype(jnp.float32)
    for k in range(n):
        acc = acc + jnp.dot(qpad_ref[:, k:k + L, :].reshape(R, hid),
                            wk_ref[k], preferred_element_type=jnp.float32)

    # ---- (M @ F.T per head) -> concat heads -> W_o, all fused into W3 -------
    out_pre = jnp.dot(acc, w3_ref[...],
                      preferred_element_type=jnp.float32) + bo_ref[...]

    def _ln(x, g, b):
        mu = jnp.mean(x, axis=-1, keepdims=True)
        var = jnp.mean((x - mu) ** 2, axis=-1, keepdims=True)
        return (x - mu) * lax.rsqrt(var + eps) * g + b

    # ---- LN1 -> FFN -> LN2 (dropouts are identity in eval mode) -------------
    x1 = _ln(out_pre + q2, g1_ref[...], be1_ref[...])
    h1 = jnp.maximum(jnp.dot(x1, w1_ref[...],
                             preferred_element_type=jnp.float32) + b1_ref[...],
                     0.0)
    ffn = jnp.dot(h1, w2_ref[...],
                  preferred_element_type=jnp.float32) + b2_ref[...]
    y = _ln(ffn + q2, g2_ref[...], be2_ref[...])
    out_ref[...] = y.reshape(BT, L, d).astype(out_ref.dtype)

    # ---- G path: MaxPool1d(l) of the conv output, reusing the fused W3 ------
    if need_g:
        Lp = L // l
        m3 = acc.reshape(BT, L, hm)[:, :Lp * l, :]      # floor, like MaxPool1d
        mmax = jnp.max(m3.reshape(BT * Lp, l, hm), axis=1)
        g_pre = jnp.dot(mmax, w3_ref[...],
                        preferred_element_type=jnp.float32) + bo_ref[...]
        g_out_ref[...] = g_pre.reshape(BT, Lp, d).astype(g_out_ref.dtype)


# ----------------------------------------------------------------------------
# Wrapper: one-time weight prep (block-diag conv taps, fused W3) + pallas_call
# ----------------------------------------------------------------------------
def act_block_forward(Q, p, cfg):
    B, L, d = Q.shape
    h, n, m, l = cfg["h"], cfg["n"], cfg["m"], cfg["l"]
    hid = cfg["num_of_hid"]
    need_g = cfg["need_g"]
    dph = hid // h
    hm = h * m
    CN = dph * n
    dff = p["w1"].shape[1]
    pad_l = (n - 1) // 2
    Lp = L // l
    if need_g:
        assert Lp >= 1, "need_g requires L >= l"

    hp = lax.Precision.HIGHEST

    # --- weight prep (once, outside the kernel) ------------------------------
    conv_w = p["conv_w"]                                   # (m, dph, n)
    eye_h = jnp.eye(h, dtype=conv_w.dtype)
    # per-tap block-diagonal conv weights over heads: (n, hid, h*m)
    wk_stack = jnp.stack(
        [jnp.kron(eye_h, conv_w[:, :, k].T) for k in range(n)], axis=0)
    cbt = jnp.tile(p["conv_b"], h).reshape(1, hm)
    # F as in the PyTorch module (dph*n, m); fuse with W_o per head:
    #   W3[h*m + o, :] = sum_j F[j, o] * W_o[h*CN + j, :]
    F = jnp.transpose(conv_w, (1, 2, 0)).reshape(CN, m)
    wo3 = p["wo"].reshape(h, CN, d)
    w3 = jnp.einsum("jo,hjd->hod", F, wo3, precision=hp).reshape(hm, d)

    # --- batch tiling: ~512 rows (BT*L) per grid step.  Per-step VMEM is
    # 2x(Q + out + G blocks) + weights + qpad scratch; for production sizes
    # keep this well under the scoped VMEM limit (16 MiB v5e / 32 MiB v6e,v7x)
    # by shrinking row_target or raising vmem_limit_bytes explicitly. ---------
    row_target = 512
    bt = max(1, min(B, max(1, row_target // max(L, 1))))
    while B % bt:
        bt -= 1

    const2 = lambda a, b_: pl.BlockSpec((a, b_), lambda i: (0, 0))
    in_specs = [
        pl.BlockSpec((bt, L, d), lambda i: (i, 0, 0)),          # Q
        const2(d, hid), const2(1, hid),                         # W_q, b_q
        pl.BlockSpec((n, hid, hm), lambda i: (0, 0, 0)),        # conv taps
        const2(1, hm),                                          # conv bias
        const2(hm, d), const2(1, d),                            # W3, b_o
        const2(d, dff), const2(1, dff),                         # W1, b1
        const2(dff, d), const2(1, d),                           # W2, b2
        const2(1, d), const2(1, d),                             # ln1 g, b
        const2(1, d), const2(1, d),                             # ln2 g, b
    ]
    if need_g:
        out_shape = (jax.ShapeDtypeStruct((B, L, d), Q.dtype),
                     jax.ShapeDtypeStruct((B, Lp, d), Q.dtype))
        out_specs = (pl.BlockSpec((bt, L, d), lambda i: (i, 0, 0)),
                     pl.BlockSpec((bt, Lp, d), lambda i: (i, 0, 0)))
    else:
        out_shape = jax.ShapeDtypeStruct((B, L, d), Q.dtype)
        out_specs = pl.BlockSpec((bt, L, d), lambda i: (i, 0, 0))

    kernel = functools.partial(_act_block_kernel, n=n, l=l, pad_l=pad_l,
                               need_g=need_g)
    res = pl.pallas_call(
        kernel,
        out_shape=out_shape,
        grid=(B // bt,),
        in_specs=in_specs,
        out_specs=out_specs,
        scratch_shapes=[pltpu.VMEM((bt, L + n - 1, hid), jnp.float32)],
        compiler_params=pltpu.CompilerParams(
            dimension_semantics=("parallel",)),
    )(Q, p["wq"], p["bq"].reshape(1, hid), wk_stack, cbt, w3,
      p["bo"].reshape(1, d),
      p["w1"], p["b1"].reshape(1, dff), p["w2"], p["b2"].reshape(1, d),
      p["ln1_g"].reshape(1, d), p["ln1_b"].reshape(1, d),
      p["ln2_g"].reshape(1, d), p["ln2_b"].reshape(1, d))

    if need_g:
        out, G = res
        return out, G
    return res, None


# ----------------------------------------------------------------------------
# Pure-JAX reference (mirrors the PyTorch module, eval mode)
# ----------------------------------------------------------------------------
def reference_forward(Q, p, cfg):
    B, L, d = Q.shape
    h, n, m, l = cfg["h"], cfg["n"], cfg["m"], cfg["l"]
    hid = cfg["num_of_hid"]
    need_g = cfg["need_g"]
    dph = hid // h

    qlin = Q @ p["wq"] + p["bq"]
    qk = (qlin.reshape(B, L, h, dph).transpose(0, 2, 1, 3)
              .reshape(B * h, L, dph))
    qncl = jnp.transpose(qk, (0, 2, 1))                       # (BH, dph, L)
    pad_l = (n - 1) // 2
    pad_r = (n - 1) - pad_l
    M = lax.conv_general_dilated(qncl, p["conv_w"], (1,), [(pad_l, pad_r)],
                                 dimension_numbers=("NCH", "OIH", "NCH"))
    M = M + p["conv_b"][None, :, None]                        # (BH, m, L)
    F = jnp.transpose(p["conv_w"], (1, 2, 0)).reshape(dph * n, m)
    O = jnp.einsum("jo,bot->btj", F, M)                       # (BH, L, dph*n)
    concat = (O.reshape(B, h, L, dph * n).transpose(0, 2, 1, 3)
               .reshape(B, L, hid * n))
    re = concat @ p["wo"] + p["bo"]

    def ln(x, g, b):
        mu = x.mean(-1, keepdims=True)
        var = ((x - mu) ** 2).mean(-1, keepdims=True)
        return (x - mu) / jnp.sqrt(var + 1e-5) * g + b

    x1 = ln(re + Q, p["ln1_g"], p["ln1_b"])
    ffn = jnp.maximum(x1 @ p["w1"] + p["b1"], 0.0) @ p["w2"] + p["b2"]
    out = ln(ffn + Q, p["ln2_g"], p["ln2_b"])

    G = None
    if need_g:
        Lp = L // l
        Mm = M.reshape(B * h, m, Lp, l).max(-1)
        g_ = jnp.einsum("jo,bop->bpj", F, Mm)
        gcat = (g_.reshape(B, h, Lp, dph * n).transpose(0, 2, 1, 3)
                  .reshape(B, Lp, hid * n))
        G = gcat @ p["wo"] + p["bo"]
    return out, G


# ----------------------------------------------------------------------------
if __name__ == "__main__":
    cfg = dict(n=3, d=32, m=8, h=4, l=4, d_ff=64, num_of_hid=32,
               need_g=True)
    B, L = 2, 16
    d, hid, h, n, m = cfg["d"], cfg["num_of_hid"], cfg["h"], cfg["n"], cfg["m"]
    dph = hid // h
    hn = hid * n
    dff = cfg["d_ff"]

    key = jax.random.PRNGKey(0)
    ks = jax.random.split(key, 12)

    def init(k, shape, scale=0.1):
        return jax.random.normal(k, shape, jnp.float32) * scale

    params = dict(
        wq=init(ks[0], (d, hid)), bq=init(ks[1], (hid,)),
        wo=init(ks[2], (hn, d)), bo=init(ks[3], (d,)),
        conv_w=init(ks[4], (m, dph, n)), conv_b=init(ks[5], (m,)),
        w1=init(ks[6], (d, dff)), b1=init(ks[7], (dff,)),
        w2=init(ks[8], (dff, d)), b2=init(ks[9], (d,)),
        ln1_g=jnp.ones((d,), jnp.float32), ln1_b=jnp.zeros((d,), jnp.float32),
        ln2_g=jnp.ones((d,), jnp.float32), ln2_b=jnp.zeros((d,), jnp.float32),
    )

    Q = jax.random.normal(ks[10], (B, L, d), jnp.float32)

    out, G = act_block_forward(Q, params, cfg)
    out = jax.block_until_ready(out)
    G = jax.block_until_ready(G)

    ref_out, ref_G = reference_forward(Q, params, cfg)
    np.testing.assert_allclose(np.asarray(out), np.asarray(ref_out),
                               rtol=2e-4, atol=2e-4)
    np.testing.assert_allclose(np.asarray(G), np.asarray(ref_G),
                               rtol=2e-4, atol=2e-4)
    print("KERNEL_OK")
</pallas_src>

<mosaic_0001>
module attributes {stable_mosaic.version = 11 : i64} {
  func.func @_act_block_kernel(%arg0: i32, %arg1: memref<2x16x32xf32, #tpu.memory_space<vmem>>, %arg2: memref<32x32xf32, #tpu.memory_space<vmem>>, %arg3: memref<1x32xf32, #tpu.memory_space<vmem>>, %arg4: memref<3x32x32xf32, #tpu.memory_space<vmem>>, %arg5: memref<1x32xf32, #tpu.memory_space<vmem>>, %arg6: memref<32x32xf32, #tpu.memory_space<vmem>>, %arg7: memref<1x32xf32, #tpu.memory_space<vmem>>, %arg8: memref<32x64xf32, #tpu.memory_space<vmem>>, %arg9: memref<1x64xf32, #tpu.memory_space<vmem>>, %arg10: memref<64x32xf32, #tpu.memory_space<vmem>>, %arg11: memref<1x32xf32, #tpu.memory_space<vmem>>, %arg12: memref<1x32xf32, #tpu.memory_space<vmem>>, %arg13: memref<1x32xf32, #tpu.memory_space<vmem>>, %arg14: memref<1x32xf32, #tpu.memory_space<vmem>>, %arg15: memref<1x32xf32, #tpu.memory_space<vmem>>, %arg16: memref<2x16x32xf32, #tpu.memory_space<vmem>>, %arg17: memref<2x4x32xf32, #tpu.memory_space<vmem>>, %arg18: memref<2x18x32xf32, #tpu.memory_space<vmem>>) attributes {dimension_semantics = [#tpu.dimension_semantics<parallel>], iteration_bounds = array<i64: 1>, scalar_prefetch = 0 : i64, scratch_operands = 1 : i64, tpu.core_type = #tpu.core_type<tc>, window_params = [{transform_indices = @transform_0, window_bounds = array<i64: 2, 16, 32>}, {pipeline_mode = #tpu.pipeline_mode<synchronous>, transform_indices = @transform_1, window_bounds = array<i64: 32, 32>}, {pipeline_mode = #tpu.pipeline_mode<synchronous>, transform_indices = @transform_2, window_bounds = array<i64: 1, 32>}, {pipeline_mode = #tpu.pipeline_mode<synchronous>, transform_indices = @transform_3, window_bounds = array<i64: 3, 32, 32>}, {pipeline_mode = #tpu.pipeline_mode<synchronous>, transform_indices = @transform_4, window_bounds = array<i64: 1, 32>}, {pipeline_mode = #tpu.pipeline_mode<synchronous>, transform_indices = @transform_5, window_bounds = array<i64: 32, 32>}, {pipeline_mode = #tpu.pipeline_mode<synchronous>, transform_indices = @transform_6, window_bounds = array<i64: 1, 32>}, {pipeline_mode = #tpu.pipeline_mode<synchronous>, transform_indices = @transform_7, window_bounds = array<i64: 32, 64>}, {pipeline_mode = #tpu.pipeline_mode<synchronous>, transform_indices = @transform_8, window_bounds = array<i64: 1, 64>}, {pipeline_mode = #tpu.pipeline_mode<synchronous>, transform_indices = @transform_9, window_bounds = array<i64: 64, 32>}, {pipeline_mode = #tpu.pipeline_mode<synchronous>, transform_indices = @transform_10, window_bounds = array<i64: 1, 32>}, {pipeline_mode = #tpu.pipeline_mode<synchronous>, transform_indices = @transform_11, window_bounds = array<i64: 1, 32>}, {pipeline_mode = #tpu.pipeline_mode<synchronous>, transform_indices = @transform_12, window_bounds = array<i64: 1, 32>}, {pipeline_mode = #tpu.pipeline_mode<synchronous>, transform_indices = @transform_13, window_bounds = array<i64: 1, 32>}, {pipeline_mode = #tpu.pipeline_mode<synchronous>, transform_indices = @transform_14, window_bounds = array<i64: 1, 32>}, {transform_indices = @transform_15, window_bounds = array<i64: 2, 16, 32>}, {transform_indices = @transform_16, window_bounds = array<i64: 2, 4, 32>}]} {
    %c0 = arith.constant 0 : index
    %c0_0 = arith.constant 0 : index
    %c0_1 = arith.constant 0 : index
    %0 = vector.load %arg1[%c0, %c0_0, %c0_1] : memref<2x16x32xf32, #tpu.memory_space<vmem>>, vector<2x16x32xf32>
    %1 = vector.shape_cast %0 : vector<2x16x32xf32> to vector<32x32xf32>
    %c0_2 = arith.constant 0 : index
    %c0_3 = arith.constant 0 : index
    %2 = vector.load %arg2[%c0_2, %c0_3] : memref<32x32xf32, #tpu.memory_space<vmem>>, vector<32x32xf32>
    %cst = arith.constant dense<0.000000e+00> : vector<32x32xf32>
    %3 = tpu.matmul %1, %2, %cst {dimension_numbers = #tpu.dot_dimension_numbers<[1], [0], [0], [1], [0, 0, 1, 1], [], []>} : vector<32x32xf32>, vector<32x32xf32>, vector<32x32xf32> -> vector<32x32xf32>
    %c0_4 = arith.constant 0 : index
    %c0_5 = arith.constant 0 : index
    %4 = vector.load %arg3[%c0_4, %c0_5] : memref<1x32xf32, #tpu.memory_space<vmem>>, vector<1x32xf32>
    %5 = vector.broadcast %4 : vector<1x32xf32> to vector<32x32xf32>
    %6 = arith.addf %3, %5 : vector<32x32xf32>
    %cst_6 = arith.constant 0.000000e+00 : f32
    %7 = vector.broadcast %cst_6 : f32 to vector<2x1x32xf32>
    %c0_7 = arith.constant 0 : index
    %c0_8 = arith.constant 0 : index
    %c0_9 = arith.constant 0 : index
    %8 = vector.load %arg18[%c0_7, %c0_8, %c0_9] : memref<2x18x32xf32, #tpu.memory_space<vmem>>, vector<2x1x32xf32>
    tpu.vector_store %arg18[%c0_7, %c0_8, %c0_9], %7 {strides = array<i32>} : memref<2x18x32xf32, #tpu.memory_space<vmem>>, vector<2x1x32xf32>,
    %cst_10 = arith.constant 0.000000e+00 : f32
    %9 = vector.broadcast %cst_10 : f32 to vector<2x1x32xf32>
    %c0_11 = arith.constant 0 : index
    %c17 = arith.constant 17 : index
    %c0_12 = arith.constant 0 : index
    %10 = vector.load %arg18[%c0_11, %c17, %c0_12] : memref<2x18x32xf32, #tpu.memory_space<vmem>>, vector<2x1x32xf32>
    tpu.vector_store %arg18[%c0_11, %c17, %c0_12], %9 {strides = array<i32>} : memref<2x18x32xf32, #tpu.memory_space<vmem>>, vector<2x1x32xf32>,
    %11 = vector.shape_cast %6 : vector<32x32xf32> to vector<2x16x32xf32>
    %c0_13 = arith.constant 0 : index
    %c1 = arith.constant 1 : index
    %c0_14 = arith.constant 0 : index
    %12 = vector.load %arg18[%c0_13, %c1, %c0_14] : memref<2x18x32xf32, #tpu.memory_space<vmem>>, vector<2x16x32xf32>
    tpu.vector_store %arg18[%c0_13, %c1, %c0_14], %11 {strides = array<i32>} : memref<2x18x32xf32, #tpu.memory_space<vmem>>, vector<2x16x32xf32>,
    %c0_15 = arith.constant 0 : index
    %c0_16 = arith.constant 0 : index
    %13 = vector.load %arg5[%c0_15, %c0_16] : memref<1x32xf32, #tpu.memory_space<vmem>>, vector<1x32xf32>
    %14 = vector.shape_cast %13 : vector<1x32xf32> to vector<1x32xf32>
    %15 = vector.broadcast %14 : vector<1x32xf32> to vector<32x32xf32>
    %c0_17 = arith.constant 0 : index
    %c0_18 = arith.constant 0 : index
    %c0_19 = arith.constant 0 : index
    %16 = vector.load %arg18[%c0_17, %c0_18, %c0_19] : memref<2x18x32xf32, #tpu.memory_space<vmem>>, vector<2x16x32xf32>
    %17 = vector.shape_cast %16 : vector<2x16x32xf32> to vector<32x32xf32>
    %c0_20 = arith.constant 0 : index
    %c0_21 = arith.constant 0 : index
    %c0_22 = arith.constant 0 : index
    %18 = vector.load %arg4[%c0_20, %c0_21, %c0_22] : memref<3x32x32xf32, #tpu.memory_space<vmem>>, vector<1x32x32xf32>
    %19 = vector.shape_cast %18 : vector<1x32x32xf32> to vector<32x32xf32>
    %cst_23 = arith.constant dense<0.000000e+00> : vector<32x32xf32>
    %20 = tpu.matmul %17, %19, %cst_23 {dimension_numbers = #tpu.dot_dimension_numbers<[1], [0], [0], [1], [0, 0, 1, 1], [], []>} : vector<32x32xf32>, vector<32x32xf32>, vector<32x32xf32> -> vector<32x32xf32>
    %21 = arith.addf %15, %20 : vector<32x32xf32>
    %c0_24 = arith.constant 0 : index
    %c1_25 = arith.constant 1 : index
    %c0_26 = arith.constant 0 : index
    %22 = vector.load %arg18[%c0_24, %c1_25, %c0_26] : memref<2x18x32xf32, #tpu.memory_space<vmem>>, vector<2x16x32xf32>
    %23 = vector.shape_cast %22 : vector<2x16x32xf32> to vector<32x32xf32>
    %c1_27 = arith.constant 1 : index
    %c0_28 = arith.constant 0 : index
    %c0_29 = arith.constant 0 : index
    %24 = vector.load %arg4[%c1_27, %c0_28, %c0_29] : memref<3x32x32xf32, #tpu.memory_space<vmem>>, vector<1x32x32xf32>
    %25 = vector.shape_cast %24 : vector<1x32x32xf32> to vector<32x32xf32>
    %cst_30 = arith.constant dense<0.000000e+00> : vector<32x32xf32>
    %26 = tpu.matmul %23, %25, %cst_30 {dimension_numbers = #tpu.dot_dimension_numbers<[1], [0], [0], [1], [0, 0, 1, 1], [], []>} : vector<32x32xf32>, vector<32x32xf32>, vector<32x32xf32> -> vector<32x32xf32>
    %27 = arith.addf %21, %26 : vector<32x32xf32>
    %c0_31 = arith.constant 0 : index
    %c2 = arith.constant 2 : index
    %c0_32 = arith.constant 0 : index
    %28 = vector.load %arg18[%c0_31, %c2, %c0_32] : memref<2x18x32xf32, #tpu.memory_space<vmem>>, vector<2x16x32xf32>
    %29 = vector.shape_cast %28 : vector<2x16x32xf32> to vector<32x32xf32>
    %c2_33 = arith.constant 2 : index
    %c0_34 = arith.constant 0 : index
    %c0_35 = arith.constant 0 : index
    %30 = vector.load %arg4[%c2_33, %c0_34, %c0_35] : memref<3x32x32xf32, #tpu.memory_space<vmem>>, vector<1x32x32xf32>
    %31 = vector.shape_cast %30 : vector<1x32x32xf32> to vector<32x32xf32>
    %cst_36 = arith.constant dense<0.000000e+00> : vector<32x32xf32>
    %32 = tpu.matmul %29, %31, %cst_36 {dimension_numbers = #tpu.dot_dimension_numbers<[1], [0], [0], [1], [0, 0, 1, 1], [], []>} : vector<32x32xf32>, vector<32x32xf32>, vector<32x32xf32> -> vector<32x32xf32>
    %33 = arith.addf %27, %32 : vector<32x32xf32>
    %c0_37 = arith.constant 0 : index
    %c0_38 = arith.constant 0 : index
    %34 = vector.load %arg6[%c0_37, %c0_38] : memref<32x32xf32, #tpu.memory_space<vmem>>, vector<32x32xf32>
    %cst_39 = arith.constant dense<0.000000e+00> : vector<32x32xf32>
    %35 = tpu.matmul %33, %34, %cst_39 {dimension_numbers = #tpu.dot_dimension_numbers<[1], [0], [0], [1], [0, 0, 1, 1], [], []>} : vector<32x32xf32>, vector<32x32xf32>, vector<32x32xf32> -> vector<32x32xf32>
    %c0_40 = arith.constant 0 : index
    %c0_41 = arith.constant 0 : index
    %36 = vector.load %arg7[%c0_40, %c0_41] : memref<1x32xf32, #tpu.memory_space<vmem>>, vector<1x32xf32>
    %37 = vector.broadcast %36 : vector<1x32xf32> to vector<32x32xf32>
    %38 = arith.addf %35, %37 : vector<32x32xf32>
    %39 = arith.addf %38, %1 : vector<32x32xf32>
    %c0_42 = arith.constant 0 : index
    %c0_43 = arith.constant 0 : index
    %40 = vector.load %arg12[%c0_42, %c0_43] : memref<1x32xf32, #tpu.memory_space<vmem>>, vector<1x32xf32>
    %c0_44 = arith.constant 0 : index
    %c0_45 = arith.constant 0 : index
    %41 = vector.load %arg13[%c0_44, %c0_45] : memref<1x32xf32, #tpu.memory_space<vmem>>, vector<1x32xf32>
    %cst_46 = arith.constant dense<0.000000e+00> : vector<32xf32>
    %42 = vector.multi_reduction <add>, %39, %cst_46 [1] : vector<32x32xf32> to vector<32xf32>
    %43 = vector.shape_cast %42 : vector<32xf32> to vector<32x1xf32>
    %cst_47 = arith.constant 3.200000e+01 : f32
    %44 = vector.broadcast %cst_47 : f32 to vector<32x1xf32>
    %45 = arith.divf %43, %44 : vector<32x1xf32>
    %46 = vector.broadcast %45 : vector<32x1xf32> to vector<32x32xf32>
    %47 = arith.subf %39, %46 : vector<32x32xf32>
    %48 = arith.mulf %47, %47 : vector<32x32xf32>
    %cst_48 = arith.constant dense<0.000000e+00> : vector<32xf32>
    %49 = vector.multi_reduction <add>, %48, %cst_48 [1] : vector<32x32xf32> to vector<32xf32>
    %50 = vector.shape_cast %49 : vector<32xf32> to vector<32x1xf32>
    %cst_49 = arith.constant 3.200000e+01 : f32
    %51 = vector.broadcast %cst_49 : f32 to vector<32x1xf32>
    %52 = arith.divf %50, %51 : vector<32x1xf32>
    %53 = vector.broadcast %45 : vector<32x1xf32> to vector<32x32xf32>
    %54 = arith.subf %39, %53 : vector<32x32xf32>
    %cst_50 = arith.constant 9.99999974E-6 : f32
    %55 = vector.broadcast %cst_50 : f32 to vector<32x1xf32>
    %56 = arith.addf %52, %55 : vector<32x1xf32>
    %57 = math.rsqrt %56 : vector<32x1xf32>
    %58 = vector.broadcast %57 : vector<32x1xf32> to vector<32x32xf32>
    %59 = arith.mulf %54, %58 : vector<32x32xf32>
    %60 = vector.broadcast %40 : vector<1x32xf32> to vector<32x32xf32>
    %61 = arith.mulf %59, %60 : vector<32x32xf32>
    %62 = vector.broadcast %41 : vector<1x32xf32> to vector<32x32xf32>
    %63 = arith.addf %61, %62 : vector<32x32xf32>
    %c0_51 = arith.constant 0 : index
    %c0_52 = arith.constant 0 : index
    %64 = vector.load %arg8[%c0_51, %c0_52] : memref<32x64xf32, #tpu.memory_space<vmem>>, vector<32x64xf32>
    %cst_53 = arith.constant dense<0.000000e+00> : vector<32x64xf32>
    %65 = tpu.matmul %63, %64, %cst_53 {dimension_numbers = #tpu.dot_dimension_numbers<[1], [0], [0], [1], [0, 0, 1, 1], [], []>} : vector<32x32xf32>, vector<32x64xf32>, vector<32x64xf32> -> vector<32x64xf32>
    %c0_54 = arith.constant 0 : index
    %c0_55 = arith.constant 0 : index
    %66 = vector.load %arg9[%c0_54, %c0_55] : memref<1x64xf32, #tpu.memory_space<vmem>>, vector<1x64xf32>
    %67 = vector.broadcast %66 : vector<1x64xf32> to vector<32x64xf32>
    %68 = arith.addf %65, %67 : vector<32x64xf32>
    %cst_56 = arith.constant 0.000000e+00 : f32
    %69 = vector.broadcast %cst_56 : f32 to vector<32x64xf32>
    %70 = arith.maximumf %68, %69 : vector<32x64xf32>
    %c0_57 = arith.constant 0 : index
    %c0_58 = arith.constant 0 : index
    %71 = vector.load %arg10[%c0_57, %c0_58] : memref<64x32xf32, #tpu.memory_space<vmem>>, vector<64x32xf32>
    %cst_59 = arith.constant dense<0.000000e+00> : vector<32x32xf32>
    %72 = tpu.matmul %70, %71, %cst_59 {dimension_numbers = #tpu.dot_dimension_numbers<[1], [0], [0], [1], [0, 0, 1, 1], [], []>} : vector<32x64xf32>, vector<64x32xf32>, vector<32x32xf32> -> vector<32x32xf32>
    %c0_60 = arith.constant 0 : index
    %c0_61 = arith.constant 0 : index
    %73 = vector.load %arg11[%c0_60, %c0_61] : memref<1x32xf32, #tpu.memory_space<vmem>>, vector<1x32xf32>
    %74 = vector.broadcast %73 : vector<1x32xf32> to vector<32x32xf32>
    %75 = arith.addf %72, %74 : vector<32x32xf32>
    %76 = arith.addf %75, %1 : vector<32x32xf32>
    %c0_62 = arith.constant 0 : index
    %c0_63 = arith.constant 0 : index
    %77 = vector.load %arg14[%c0_62, %c0_63] : memref<1x32xf32, #tpu.memory_space<vmem>>, vector<1x32xf32>
    %c0_64 = arith.constant 0 : index
    %c0_65 = arith.constant 0 : index
    %78 = vector.load %arg15[%c0_64, %c0_65] : memref<1x32xf32, #tpu.memory_space<vmem>>, vector<1x32xf32>
    %cst_66 = arith.constant dense<0.000000e+00> : vector<32xf32>
    %79 = vector.multi_reduction <add>, %76, %cst_66 [1] : vector<32x32xf32> to vector<32xf32>
    %80 = vector.shape_cast %79 : vector<32xf32> to vector<32x1xf32>
    %cst_67 = arith.constant 3.200000e+01 : f32
    %81 = vector.broadcast %cst_67 : f32 to vector<32x1xf32>
    %82 = arith.divf %80, %81 : vector<32x1xf32>
    %83 = vector.broadcast %82 : vector<32x1xf32> to vector<32x32xf32>
    %84 = arith.subf %76, %83 : vector<32x32xf32>
    %85 = arith.mulf %84, %84 : vector<32x32xf32>
    %cst_68 = arith.constant dense<0.000000e+00> : vector<32xf32>
    %86 = vector.multi_reduction <add>, %85, %cst_68 [1] : vector<32x32xf32> to vector<32xf32>
    %87 = vector.shape_cast %86 : vector<32xf32> to vector<32x1xf32>
    %cst_69 = arith.constant 3.200000e+01 : f32
    %88 = vector.broadcast %cst_69 : f32 to vector<32x1xf32>
    %89 = arith.divf %87, %88 : vector<32x1xf32>
    %90 = vector.broadcast %82 : vector<32x1xf32> to vector<32x32xf32>
    %91 = arith.subf %76, %90 : vector<32x32xf32>
    %cst_70 = arith.constant 9.99999974E-6 : f32
    %92 = vector.broadcast %cst_70 : f32 to vector<32x1xf32>
    %93 = arith.addf %89, %92 : vector<32x1xf32>
    %94 = math.rsqrt %93 : vector<32x1xf32>
    %95 = vector.broadcast %94 : vector<32x1xf32> to vector<32x32xf32>
    %96 = arith.mulf %91, %95 : vector<32x32xf32>
    %97 = vector.broadcast %77 : vector<1x32xf32> to vector<32x32xf32>
    %98 = arith.mulf %96, %97 : vector<32x32xf32>
    %99 = vector.broadcast %78 : vector<1x32xf32> to vector<32x32xf32>
    %100 = arith.addf %98, %99 : vector<32x32xf32>
    %101 = vector.shape_cast %100 : vector<32x32xf32> to vector<2x16x32xf32>
    %c0_71 = arith.constant 0 : index
    %c0_72 = arith.constant 0 : index
    %c0_73 = arith.constant 0 : index
    %102 = vector.load %arg16[%c0_71, %c0_72, %c0_73] : memref<2x16x32xf32, #tpu.memory_space<vmem>>, vector<2x16x32xf32>
    tpu.vector_store %arg16[%c0_71, %c0_72, %c0_73], %101 {strides = array<i32>} : memref<2x16x32xf32, #tpu.memory_space<vmem>>, vector<2x16x32xf32>,
    %103 = vector.shape_cast %33 : vector<32x32xf32> to vector<2x16x32xf32>
    %104 = vector.shape_cast %103 : vector<2x16x32xf32> to vector<8x4x32xf32>
    %cst_74 = arith.constant dense<0xFF800000> : vector<8x32xf32>
    %105 = vector.multi_reduction <maximumf>, %104, %cst_74 [1] : vector<8x4x32xf32> to vector<8x32xf32>
    %c0_75 = arith.constant 0 : index
    %c0_76 = arith.constant 0 : index
    %106 = vector.load %arg6[%c0_75, %c0_76] : memref<32x32xf32, #tpu.memory_space<vmem>>, vector<32x32xf32>
    %cst_77 = arith.constant dense<0.000000e+00> : vector<8x32xf32>
    %107 = tpu.matmul %105, %106, %cst_77 {dimension_numbers = #tpu.dot_dimension_numbers<[1], [0], [0], [1], [0, 0, 1, 1], [], []>} : vector<8x32xf32>, vector<32x32xf32>, vector<8x32xf32> -> vector<8x32xf32>
    %c0_78 = arith.constant 0 : index
    %c0_79 = arith.constant 0 : index
    %108 = vector.load %arg7[%c0_78, %c0_79] : memref<1x32xf32, #tpu.memory_space<vmem>>, vector<1x32xf32>
    %109 = vector.broadcast %108 : vector<1x32xf32> to vector<8x32xf32>
    %110 = arith.addf %107, %109 : vector<8x32xf32>
    %111 = vector.shape_cast %110 : vector<8x32xf32> to vector<2x4x32xf32>
    %c0_80 = arith.constant 0 : index
    %c0_81 = arith.constant 0 : index
    %c0_82 = arith.constant 0 : index
    %112 = vector.load %arg17[%c0_80, %c0_81, %c0_82] : memref<2x4x32xf32, #tpu.memory_space<vmem>>, vector<2x4x32xf32>
    tpu.vector_store %arg17[%c0_80, %c0_81, %c0_82], %111 {strides = array<i32>} : memref<2x4x32xf32, #tpu.memory_space<vmem>>, vector<2x4x32xf32>,
    return
  }
  func.func @transform_0(%arg0: i32) -> (i32, i32, i32) {
    %c0_i32 = arith.constant 0 : i32
    %c0_i32_0 = arith.constant 0 : i32
    %c0_i32_1 = arith.constant 0 : i32
    return %arg0, %c0_i32, %c0_i32_0 : i32, i32, i32
  }
  func.func @transform_1(%arg0: i32) -> (i32, i32) {
    %c0_i32 = arith.constant 0 : i32
    %c0_i32_0 = arith.constant 0 : i32
    %c0_i32_1 = arith.constant 0 : i32
    return %c0_i32, %c0_i32_0 : i32, i32
  }
  func.func @transform_2(%arg0: i32) -> (i32, i32) {
    %c0_i32 = arith.constant 0 : i32
    %c0_i32_0 = arith.constant 0 : i32
    %c0_i32_1 = arith.constant 0 : i32
    return %c0_i32, %c0_i32_0 : i32, i32
  }
  func.func @transform_3(%arg0: i32) -> (i32, i32, i32) {
    %c0_i32 = arith.constant 0 : i32
    %c0_i32_0 = arith.constant 0 : i32
    %c0_i32_1 = arith.constant 0 : i32
    %c0_i32_2 = arith.constant 0 : i32
    return %c0_i32, %c0_i32_0, %c0_i32_1 : i32, i32, i32
  }
  func.func @transform_4(%arg0: i32) -> (i32, i32) {
    %c0_i32 = arith.constant 0 : i32
    %c0_i32_0 = arith.constant 0 : i32
    %c0_i32_1 = arith.constant 0 : i32
    return %c0_i32, %c0_i32_0 : i32, i32
  }
  func.func @transform_5(%arg0: i32) -> (i32, i32) {
    %c0_i32 = arith.constant 0 : i32
    %c0_i32_0 = arith.constant 0 : i32
    %c0_i32_1 = arith.constant 0 : i32
    return %c0_i32, %c0_i32_0 : i32, i32
  }
  func.func @transform_6(%arg0: i32) -> (i32, i32) {
    %c0_i32 = arith.constant 0 : i32
    %c0_i32_0 = arith.constant 0 : i32
    %c0_i32_1 = arith.constant 0 : i32
    return %c0_i32, %c0_i32_0 : i32, i32
  }
  func.func @transform_7(%arg0: i32) -> (i32, i32) {
    %c0_i32 = arith.constant 0 : i32
    %c0_i32_0 = arith.constant 0 : i32
    %c0_i32_1 = arith.constant 0 : i32
    return %c0_i32, %c0_i32_0 : i32, i32
  }
  func.func @transform_8(%arg0: i32) -> (i32, i32) {
    %c0_i32 = arith.constant 0 : i32
    %c0_i32_0 = arith.constant 0 : i32
    %c0_i32_1 = arith.constant 0 : i32
    return %c0_i32, %c0_i32_0 : i32, i32
  }
  func.func @transform_9(%arg0: i32) -> (i32, i32) {
    %c0_i32 = arith.constant 0 : i32
    %c0_i32_0 = arith.constant 0 : i32
    %c0_i32_1 = arith.constant 0 : i32
    return %c0_i32, %c0_i32_0 : i32, i32
  }
  func.func @transform_10(%arg0: i32) -> (i32, i32) {
    %c0_i32 = arith.constant 0 : i32
    %c0_i32_0 = arith.constant 0 : i32
    %c0_i32_1 = arith.constant 0 : i32
    return %c0_i32, %c0_i32_0 : i32, i32
  }
  func.func @transform_11(%arg0: i32) -> (i32, i32) {
    %c0_i32 = arith.constant 0 : i32
    %c0_i32_0 = arith.constant 0 : i32
    %c0_i32_1 = arith.constant 0 : i32
    return %c0_i32, %c0_i32_0 : i32, i32
  }
  func.func @transform_12(%arg0: i32) -> (i32, i32) {
    %c0_i32 = arith.constant 0 : i32
    %c0_i32_0 = arith.constant 0 : i32
    %c0_i32_1 = arith.constant 0 : i32
    return %c0_i32, %c0_i32_0 : i32, i32
  }
  func.func @transform_13(%arg0: i32) -> (i32, i32) {
    %c0_i32 = arith.constant 0 : i32
    %c0_i32_0 = arith.constant 0 : i32
    %c0_i32_1 = arith.constant 0 : i32
    return %c0_i32, %c0_i32_0 : i32, i32
  }
  func.func @transform_14(%arg0: i32) -> (i32, i32) {
    %c0_i32 = arith.constant 0 : i32
    %c0_i32_0 = arith.constant 0 : i32
    %c0_i32_1 = arith.constant 0 : i32
    return %c0_i32, %c0_i32_0 : i32, i32
  }
  func.func @transform_15(%arg0: i32) -> (i32, i32, i32) {
    %c0_i32 = arith.constant 0 : i32
    %c0_i32_0 = arith.constant 0 : i32
    %c0_i32_1 = arith.constant 0 : i32
    return %arg0, %c0_i32, %c0_i32_0 : i32, i32, i32
  }
  func.func @transform_16(%arg0: i32) -> (i32, i32, i32) {
    %c0_i32 = arith.constant 0 : i32
    %c0_i32_0 = arith.constant 0 : i32
    %c0_i32_1 = arith.constant 0 : i32
    return %arg0, %c0_i32, %c0_i32_0 : i32, i32, i32
  }
}

</mosaic_0001>

<bundles_post_ra>
// kernel: tpu_custom_call.1
= control target key start
LH: loop header
LB: loop body
LE: loop exit
PB: predicated region body
PF: predicated region fallthrough
CT: control target
= control target key end

     0   :  { %s1474_s0 = inlined_call_operand.hbm [shape: f32[2,16,32], index: 0, kind: input, shape index: {}]   ;;  %s1475_s1 = inlined_call_operand.hbm [shape: f32[32,32], index: 1, kind: input, shape index: {}]   ;;  %s1476_s2 = inlined_call_operand.vmem [shape: f32[1,32], index: 2, kind: input, shape index: {}]   ;;  %s1477_s3 = inlined_call_operand.vmem [shape: f32[3,32,32], index: 3, kind: input, shape index: {}]   ;;  %s1478_s4 = inlined_call_operand.vmem [shape: f32[1,32], index: 4, kind: input, shape index: {}]   ;;  %s1479_s5 = inlined_call_operand.hbm [shape: f32[32,32], index: 5, kind: input, shape index: {}]   ;;  %s1480_s6 = inlined_call_operand.vmem [shape: f32[1,32], index: 6, kind: input, shape index: {}]   ;;  %s1481_s7 = inlined_call_operand.hbm [shape: f32[32,64], index: 7, kind: input, shape index: {}]   ;;  %s1482_s8 = inlined_call_operand.vmem [shape: f32[1,64], index: 8, kind: input, shape index: {}]   ;;  %s1483_s9 = inlined_call_operand.vmem [shape: f32[64,32], index: 9, kind: input, shape index: {}]   ;;  %s1484_s10 = inlined_call_operand.vmem [shape: f32[1,32], index: 10, kind: input, shape index: {}]   ;;  %s1485_s11 = inlined_call_operand.vmem [shape: f32[1,32], index: 11, kind: input, shape index: {}]   ;;  %s1486_s12 = inlined_call_operand.vmem [shape: f32[1,32], index: 12, kind: input, shape index: {}]   ;;  %s1487_s13 = inlined_call_operand.vmem [shape: f32[1,32], index: 13, kind: input, shape index: {}]   ;;  %s1488_s14 = inlined_call_operand.vmem [shape: f32[1,32], index: 14, kind: input, shape index: {}]   ;;  %s1489_s15 = inlined_call_operand.hbm [shape: f32[2,16,32], index: 15, kind: output, shape index: {0}]   ;;  %s1490_s16 = inlined_call_operand.hbm [shape: f32[2,4,32], index: 16, kind: output, shape index: {1}]  }
   0x1   :  { %1491 = sst [smem:[#allocation19_spill]] %s1474_s0 }
   0x2   :  { %22 = vsyncpa [#allocation4], 0 }
   0x3   :  { %23 = vsyncpa [#allocation7], 0 }
   0x4   :  { %24 = vsyncpa [#allocation10], 0 }
   0x5   :  { %25 = vsyncpa [#allocation5], 0 }
   0x6   :  { %26 = vsyncpa [#allocation13], 0  ;;  %s44_s23 = sshll.u32 %s1475_s1, 4  ;;  %s1120_s24 = smov [#allocation6]   ;;  %s45_s23 = int_to_ptr.hbm [resolvable:$true] %s44_s23 }
   0x7   :  { %s46_s25 = sshll.u32 %s1120_s24, 4  ;;  %s1492_s28 = sld [smem:[#allocation19_spill]]  ;;  %s47_s25 = int_to_ptr.vmem [resolvable:$true] %s46_s25 }
   0x8   :  { %s1121_s30 = smov 128   ;;  %s1122_s0 = smov 8  }
   0x9   :  { %52 = dma.hbm_to_vmem [thread:$0]  %s45_s23, 512, %s47_s25, [#allocation7], %s1121_s30, %s1121_s30, %s1122_s0  }
   0xa   :  { %s1123_s17 = smov [#allocation3]   ;;  %s63_s1 = sshll.u32 %s1479_s5, 4  ;;  %s64_s1 = int_to_ptr.hbm [resolvable:$true] %s63_s1 }
   0xb   :  { %s33_s18 = sshll.u32 %s1123_s17, 4  ;;  %s78_s24 = sshll.u32 %s1481_s7, 4  ;;  %s34_s18 = int_to_ptr.vmem [resolvable:$true] %s33_s18  ;;  %s79_s24 = int_to_ptr.hbm [resolvable:$true] %s78_s24 }
   0xc   :  { %s1124_s26 = smov [#allocation8]   ;;  %s1125_s23 = smov [#allocation9]  }
   0xd   :  { %s31_s29 = sshll.u32 %s1492_s28, 4  ;;  %s65_s27 = sshll.u32 %s1124_s26, 4  ;;  %s32_s29 = int_to_ptr.hbm [resolvable:$true] %s31_s29  ;;  %s66_s27 = int_to_ptr.vmem [resolvable:$true] %s65_s27 }
   0xe   :  { %39 = dma.hbm_to_vmem [thread:$0]  %s32_s29, 512, %s34_s18, [#allocation4], %s1121_s30, %s1121_s30, %s1122_s0  }
   0xf   :  { %71 = dma.hbm_to_vmem [thread:$0]  %s64_s1, 512, %s66_s27, [#allocation7], %s1121_s30, %s1121_s30, %s1122_s0  }
  0x10   :  { %s80_s5 = sshll.u32 %s1125_s23, 4  ;;  %s81_s5 = int_to_ptr.vmem [resolvable:$true] %s80_s5 }
  0x11   :  { %86 = dma.hbm_to_vmem [thread:$0]  %s79_s24, 512, %s81_s5, [#allocation10], %s1121_s30, %s1121_s30, %s1122_s0  }
  0x12   :  { %1110 = dma.done.wait [#allocation4], 512  }
  0x13   :  { %1111 = vsyncadd [#allocation4], 4294966784 }
  0x14   :  { %1112 = dma.done.wait [#allocation7], 1024  }
  0x15   :  { %1113 = vsyncadd [#allocation7], 4294966272 }
  0x16   :  { %1114 = dma.done.wait [#allocation10], 512  }
  0x17   :  { %1115 = vsyncadd [#allocation10], 4294966784  ;;  %v124_v0 = vld [vmem:[#allocation6 + $0x18] sm:$0xff]  ;;  %v123_v1 = vld [vmem:[#allocation6 + $0x10] sm:$0xff]  ;;  %vm129_vm0 = vcmask 261120   ;;  %vm171_vm1 = vcmask 253952  }
  0x18   :  { %154 = vmatpush.msra.mxu0 %v124_v0  ;;  %v122_v2 = vld [vmem:[#allocation6 + $0x8] sm:$0xff]  ;;  %v121_v3 = vld [vmem:[#allocation6] sm:$0xff]  ;;  %v1249_v6 = vld [vmem:[#allocation3 + $0x10] sm:$0xff]  ;;  %v1126_v11 = vmov 0.0   ;;  %vm736_vm2 = vcmask 257024   ;;  %vm809_vm3 = vcmask 1041409  }
  0x19   :  { %v1241_v4 = vld [vmem:[#allocation3] sm:$0xff]  ;;  %v1245_v5 = vld [vmem:[#allocation3 + $0x8] sm:$0xff]  ;;  %v1253_v7 = vld [vmem:[#allocation3 + $0x18] sm:$0xff]  ;;  %172 = vst.msk [vmem:[#allocation2] sm:$0x1] %vm171_vm1, %v1126_v11  ;;  %vm811_vm4 = vcmask 1042434  }
  0x1a   :  { %155 = vmatpush.msra.mxu0 %v123_v1  ;;  %v191_v8 = vld [vmem:[%s1477_s3 + $0x18] sm:$0xff]  ;;  %v190_v10 = vld [vmem:[%s1477_s3 + $0x10] sm:$0xff]  ;;  %173 = vst.msk [vmem:[#allocation2 + $0x18] sm:$0x1] %vm171_vm1, %v1126_v11  ;;  %v189_v13 = vld [vmem:[%s1477_s3 + $0x8] sm:$0xff]  ;;  %vm813_vm5 = vcmask 1043459  }
  0x1b   :  { %v900_v9 = vld [vmem:[%s1477_s3 + $0x38] sm:$0xff]  ;;  %216 = vmatpush.msra.mxu1 %v191_v8  ;;  %v899_v12 = vld [vmem:[%s1477_s3 + $0x30] sm:$0xff]  ;;  %174 = vst.msk [vmem:[#allocation2 + $0x11] sm:$0x1] %vm171_vm1, %v1126_v11  ;;  %v898_v14 = vld [vmem:[%s1477_s3 + $0x28] sm:$0xff]  ;;  %vm815_vm6 = vcmask 1044484  }
  0x1c   :  { %156 = vmatpush.msra.mxu0 %v122_v2  ;;  %270 = vmatpush.msra.mxu2 %v900_v9  ;;  %175 = vst.msk [vmem:[#allocation2 + $0x29] sm:$0x1] %vm171_vm1, %v1126_v11  ;;  %v188_v15 = vld [vmem:[%s1477_s3] sm:$0xff]  ;;  %v908_v17 = vld [vmem:[%s1477_s3 + $0x58] sm:$0xff]  ;;  %v907_v18 = vld [vmem:[%s1477_s3 + $0x50] sm:$0xff]  ;;  %vm817_vm7 = vcmask 1045509  }
  0x1d   :  { %217 = vmatpush.msra.mxu1 %v190_v10  ;;  %v897_v16 = vld [vmem:[%s1477_s3 + $0x20] sm:$0xff]  ;;  %324 = vmatpush.msra.mxu3 %v908_v17  ;;  %v906_v19 = vld [vmem:[%s1477_s3 + $0x48] sm:$0xff]  ;;  %v346_v44 = vld [vmem:[#allocation8 + $0x8] sm:$0xff]  ;;  %vm819_vm8 = vcmask 1046534   ;;  %vm821_vm9 = vcmask 1047559   ;;  %s869_s5 = sshll.u32 %s1490_s16, 4  ;;  %s870_s5 = int_to_ptr.hbm [resolvable:$true] %s869_s5 }
  0x1e   :  { %157 = vmatpush.msra.mxu0 %v121_v3  ;;  %271 = vmatpush.msra.mxu2 %v899_v12  ;;  %v905_v20 = vld [vmem:[%s1477_s3 + $0x40] sm:$0xff]  ;;  %v348_v28 = vld [vmem:[#allocation8 + $0x18] sm:$0xff]  ;;  %v345_v45 = vld [vmem:[#allocation8] sm:$0xff]  ;;  %s1129_s7 = smov 64   ;;  %s1130_s25 = smov 4  }
  0x1f   :  { %889 = vmatmul.msk.f32.vlgmr.msra.gmra.mxu0 %vm129_vm0, %v1241_v4  ;;  %218 = vmatpush.msra.mxu1 %v189_v13  ;;  %v938_v21 = vld [vmem:[%s1476_s2] ss:$0 sm:$0xff]  ;;  %s856_s19 = sshll.u32 %s1489_s15, 4  ;;  %s857_s19 = int_to_ptr.hbm [resolvable:$true] %s856_s19 }
  0x20   :  { %272 = vmatpush.msra.mxu2 %v898_v14  ;;  %325 = vmatpush.msra.mxu3 %v907_v18  ;;  %v347_v29 = vld [vmem:[#allocation8 + $0x10] sm:$0xff] }
  0x21   :  { %219 = vmatpush.msra.mxu1 %v188_v15  ;;  %377 = vmatpush.msrb.mxu0 %v348_v28  ;;  %v939_v48 = vld [vmem:[%s1478_s4] ss:$0 sm:$0xff] }
  0x22   :  { %273 = vmatpush.msra.mxu2 %v897_v16  ;;  %326 = vmatpush.msra.mxu3 %v906_v19 }
  0x23   :  { %378 = vmatpush.msrb.mxu0 %v347_v29 }
  0x24   :  { %327 = vmatpush.msra.mxu3 %v905_v20 }
  0x25   :  { %379 = vmatpush.msrb.mxu0 %v346_v44 }
  0x26   :  { %837 = vmatpush.msrb.mxu3 %v348_v28 }
  0x27   :  { %890 = vmatmul.msk.f32.gmra.mxu0 %vm129_vm0, %v1245_v5 }
  0x28   :  { %838 = vmatpush.msrb.mxu3 %v347_v29  ;;  %380 = vmatpush.msrb.mxu0 %v345_v45 }
  0x2a   :  { %839 = vmatpush.msrb.mxu3 %v346_v44 }
  0x2c   :  { %840 = vmatpush.msrb.mxu3 %v345_v45 }
  0x2f   :  { %891 = vmatmul.msk.f32.gmra.mxu0 %vm129_vm0, %v1249_v6 }
  0x37   :  { %892 = vmatmul.msk.f32.gmra.mxu0 %vm129_vm0, %v1253_v7 }
  0x9c   :  { %v159_v22 = vpop.f32.mrf.mxu0 }
  0x9d   :  { %v160_v23 = vadd.f32 %v938_v21, %v159_v22 }
  0x9f   :  { %176 = vst.msk [vmem:[#allocation2 + $0x1] sm:$0xff] %vm129_vm0, %v160_v23 }
  0xa4   :  { %v162_v24 = vpop.f32.mrf.mxu0 }
  0xa5   :  { %v163_v25 = vadd.f32 %v938_v21, %v162_v24 }
  0xa6   :  { %v184_v26 = vld [vmem:[#allocation2] sm:$0xff] }
  0xa7   :  { %v237_v27 = vld [vmem:[#allocation2 + $0x1] sm:$0xff]  ;;  %177 = vst.msk [vmem:[#allocation2 + $0x9] sm:$0xff] %vm129_vm0, %v163_v25  ;;  %893 = vmatmul.msk.f32.vlgmr.msra.gmra.mxu1 %vm129_vm0, %v184_v26 }
  0xa8   :  { %901 = vmatmul.msk.f32.vlgmr.msra.gmra.mxu2 %vm129_vm0, %v237_v27 }
  0xac   :  { %v165_v30 = vpop.f32.mrf.mxu0 }
  0xad   :  { %v166_v31 = vadd.f32 %v938_v21, %v165_v30 }
  0xae   :  { %v185_v32 = vld [vmem:[#allocation2 + $0x8] sm:$0xff] }
  0xaf   :  { %v238_v33 = vld [vmem:[#allocation2 + $0x9] sm:$0xff]  ;;  %178 = vst.msk [vmem:[#allocation2 + $0x19] sm:$0xff] %vm129_vm0, %v166_v31  ;;  %894 = vmatmul.msk.f32.gmra.mxu1 %vm129_vm0, %v185_v32 }
  0xb0   :  { %v291_v34 = vld [vmem:[#allocation2 + $0x2] sm:$0xff]  ;;  %902 = vmatmul.msk.f32.gmra.mxu2 %vm129_vm0, %v238_v33  ;;  %v292_v39 = vld [vmem:[#allocation2 + $0xa] sm:$0xff] }
  0xb1   :  { %909 = vmatmul.msk.f32.vlgmr.msra.gmra.mxu3 %vm129_vm0, %v291_v34 }
  0xb4   :  { %v168_v35 = vpop.f32.mrf.mxu0 }
  0xb5   :  { %v169_v36 = vadd.f32 %v938_v21, %v168_v35 }
  0xb6   :  { %v186_v37 = vld [vmem:[#allocation2 + $0x18] sm:$0xff] }
  0xb7   :  { %v239_v38 = vld [vmem:[#allocation2 + $0x19] sm:$0xff]  ;;  %179 = vst.msk [vmem:[#allocation2 + $0x21] sm:$0xff] %vm129_vm0, %v169_v36  ;;  %895 = vmatmul.msk.f32.gmra.mxu1 %vm129_vm0, %v186_v37 }
  0xb8   :  { %903 = vmatmul.msk.f32.gmra.mxu2 %vm129_vm0, %v239_v38 }
  0xb9   :  { %910 = vmatmul.msk.f32.gmra.mxu3 %vm129_vm0, %v292_v39 }
  0xbe   :  { %v187_v40 = vld [vmem:[#allocation2 + $0x20] sm:$0xff] }
  0xbf   :  { %v240_v41 = vld [vmem:[#allocation2 + $0x21] sm:$0xff]  ;;  %896 = vmatmul.msk.f32.gmra.mxu1 %vm129_vm0, %v187_v40 }
  0xc0   :  { %v293_v42 = vld [vmem:[#allocation2 + $0x1a] sm:$0xff]  ;;  %904 = vmatmul.msk.f32.gmra.mxu2 %vm129_vm0, %v240_v41  ;;  %v294_v43 = vld [vmem:[#allocation2 + $0x22] sm:$0xff] }
  0xc1   :  { %911 = vmatmul.msk.f32.gmra.mxu3 %vm129_vm0, %v293_v42 }
  0xc9   :  { %912 = vmatmul.msk.f32.gmra.mxu3 %vm129_vm0, %v294_v43 }
 0x124   :  { %v221_v46 = vpop.f32.mrf.mxu1 }
 0x125   :  { %v233_v49 = vadd.f32 %v939_v48, %v221_v46 }
 0x12b   :  { %v275_v47 = vpop.f32.mrf.mxu2 }
 0x12c   :  { %v224_v50 = vpop.f32.mrf.mxu1  ;;  %v287_v51 = vadd.f32 %v275_v47, %v233_v49 }
 0x12d   :  { %v234_v56 = vadd.f32 %v939_v48, %v224_v50 }
 0x133   :  { %v278_v52 = vpop.f32.mrf.mxu2 }
 0x134   :  { %v329_v53 = vpop.f32.mrf.mxu3  ;;  %v288_v59 = vadd.f32 %v278_v52, %v234_v56  ;;  %v227_v61 = vpop.f32.mrf.mxu1 }
 0x135   :  { %v341_v54 = vadd.f32 %v329_v53, %v287_v51  ;;  %v235_v11 = vadd.f32 %v939_v48, %v227_v61 }
 0x137   :  { %v728_v55 = vrot.slane %v341_v54, 4  ;;  %913 = vmatmul.msk.f32.vlgmr.msrb.gmra.mxu0 %vm129_vm0, %v341_v54  ;;  %v737_v58 = vsel %vm736_vm2, %v341_v54, -inf }
 0x138   :  { %v738_v63 = vrot.slane %v737_v58, 4 }
 0x139   :  { %v744_v57 = vsel %vm736_vm2, %v728_v55, -inf }
 0x13a   :  { %v745_v60 = vrot.slane %v744_v57, 4  ;;  %v739_v10 = vmax.f32 %v737_v58, %v738_v63 }
 0x13b   :  { %v281_v1 = vpop.f32.mrf.mxu2 }
 0x13c   :  { %v332_v62 = vpop.f32.mrf.mxu3  ;;  %v746_v2 = vmax.f32 %v744_v57, %v745_v60  ;;  %v289_v16 = vadd.f32 %v281_v1, %v235_v11  ;;  %v740_v20 = vrot.slane %v739_v10, 2  ;;  %v230_v22 = vpop.f32.mrf.mxu1 }
 0x13d   :  { %v342_v0 = vadd.f32 %v332_v62, %v288_v59  ;;  %v236_v31 = vadd.f32 %v939_v48, %v230_v22 }
 0x13e   :  { %v747_v15 = vrot.slane %v746_v2, 2  ;;  %v741_v30 = vmax.f32 %v739_v10, %v740_v20 }
 0x13f   :  { %v729_v3 = vrot.slane %v342_v0, 4  ;;  %v751_v8 = vsel %vm736_vm2, %v342_v0, -inf  ;;  %914 = vmatmul.msk.f32.gmra.mxu0 %vm129_vm0, %v342_v0 }
 0x140   :  { %v752_v9 = vrot.slane %v751_v8, 4  ;;  %v748_v23 = vmax.f32 %v746_v2, %v747_v15  ;;  %v742_v42 = vrot.slane %v741_v30, 1 }
 0x141   :  { %v758_v12 = vsel %vm736_vm2, %v729_v3, -inf }
 0x142   :  { %v753_v13 = vmax.f32 %v751_v8, %v752_v9  ;;  %v759_v14 = vrot.slane %v758_v12, 4  ;;  %v749_v35 = vrot.slane %v748_v23, 1  ;;  %v743_v54 = vmax.f32 %v741_v30, %v742_v42 }
 0x143   :  { %v284_v28 = vpop.f32.mrf.mxu2 }
 0x144   :  { %v754_v17 = vrot.slane %v753_v13, 2  ;;  %v760_v18 = vmax.f32 %v758_v12, %v759_v14  ;;  %v335_v19 = vpop.f32.mrf.mxu3  ;;  %v290_v37 = vadd.f32 %v284_v28, %v236_v31  ;;  %v750_v46 = vmax.f32 %v748_v23, %v749_v35  ;;  %v941_v35 = vld [vmem:[%s1480_s6] ss:$0 sm:$0xff] }
 0x145   :  { %v343_v21 = vadd.f32 %v335_v19, %v289_v16 }
 0x146   :  { %v761_v24 = vrot.slane %v760_v18, 2  ;;  %v755_v27 = vmax.f32 %v753_v13, %v754_v17  ;;  %v810_v58 = vsel %vm809_vm3, %v750_v46, %v743_v54 }
 0x147   :  { %v730_v25 = vrot.slane %v343_v21, 4  ;;  %v765_v26 = vsel %vm736_vm2, %v343_v21, -inf  ;;  %915 = vmatmul.msk.f32.gmra.mxu0 %vm129_vm0, %v343_v21 }
 0x148   :  { %v766_v29 = vrot.slane %v765_v26, 4  ;;  %v762_v36 = vmax.f32 %v760_v18, %v761_v24  ;;  %v756_v38 = vrot.slane %v755_v27, 1  ;;  %v940_v18 = vld [vmem:[%s1480_s6] ss:$0 sm:$0xff] }
 0x149   :  { %v772_v32 = vsel %vm736_vm2, %v730_v25, -inf }
 0x14a   :  { %v767_v33 = vmax.f32 %v765_v26, %v766_v29  ;;  %v773_v34 = vrot.slane %v772_v32, 4  ;;  %v763_v47 = vrot.slane %v762_v36, 1  ;;  %v757_v50 = vmax.f32 %v755_v27, %v756_v38 }
 0x14c   :  { %v768_v39 = vrot.slane %v767_v33, 2  ;;  %v774_v40 = vmax.f32 %v772_v32, %v773_v34  ;;  %v338_v41 = vpop.f32.mrf.mxu3  ;;  %v764_v59 = vmax.f32 %v762_v36, %v763_v47  ;;  %v812_v61 = vsel %vm811_vm4, %v757_v50, %v810_v58  ;;  %v512_v47 = vld [vmem:[#allocation9 + $0x18] sm:$0xff] }
 0x14d   :  { %v344_v43 = vadd.f32 %v338_v41, %v290_v37  ;;  %541 = vmatpush.msrb.mxu1 %v512_v47 }
 0x14e   :  { %v769_v44 = vmax.f32 %v767_v33, %v768_v39  ;;  %v775_v45 = vrot.slane %v774_v40, 2  ;;  %v814_v8 = vsel %vm813_vm5, %v764_v59, %v812_v61  ;;  %v1127_v39 = vmov 32.0  }
 0x14f   :  { %v731_v49 = vrot.slane %v344_v43, 4  ;;  %v779_v48 = vsel %vm736_vm2, %v344_v43, -inf  ;;  %916 = vmatmul.msk.f32.gmra.mxu0 %vm129_vm0, %v344_v43  ;;  %948 = vrcp.f32 %v1127_v39  ;;  %v566_v39 = vld [vmem:[%s1483_s9 + $0x20] sm:$0xff] }
 0x150   :  { %v770_v51 = vrot.slane %v769_v44, 1  ;;  %v776_v52 = vmax.f32 %v774_v40, %v775_v45  ;;  %v780_v53 = vrot.slane %v779_v48, 4 }
 0x151   :  { %v786_v55 = vsel %vm736_vm2, %v731_v49, -inf }
 0x152   :  { %v781_v56 = vmax.f32 %v779_v48, %v780_v53  ;;  %v787_v57 = vrot.slane %v786_v55, 4  ;;  %v777_v60 = vrot.slane %v776_v52, 1  ;;  %v771_v62 = vmax.f32 %v769_v44, %v770_v51 }
 0x154   :  { %v782_v63 = vrot.slane %v781_v56, 2  ;;  %v788_v0 = vmax.f32 %v786_v55, %v787_v57  ;;  %v778_v3 = vmax.f32 %v776_v52, %v777_v60  ;;  %v816_v11 = vsel %vm815_vm6, %v771_v62, %v814_v8  ;;  %v510_v8 = vld [vmem:[#allocation9 + $0x8] sm:$0xff] }
 0x155   :  { %v949_v40 = vpop.eup %948 }
 0x156   :  { %v783_v1 = vmax.f32 %v781_v56, %v782_v63  ;;  %v789_v2 = vrot.slane %v788_v0, 2  ;;  %v818_v14 = vsel %vm817_vm7, %v778_v3, %v816_v11  ;;  %v413_v41 = vmul.f32 32.0, %v949_v40  ;;  %v511_v3 = vld [vmem:[#allocation9 + $0x10] sm:$0xff] }
 0x157   :  { %vm417_vm10 = vweird.f32 %v949_v40  ;;  %542 = vmatpush.msrb.mxu1 %v511_v3 }
 0x158   :  { %v784_v9 = vrot.slane %v783_v1, 1  ;;  %v790_v10 = vmax.f32 %v788_v0, %v789_v2  ;;  %v414_v42 = vsub.f32 1.0, %v413_v41 }
 0x159   :  { %543 = vmatpush.msrb.mxu1 %v510_v8 }
 0x15a   :  { %v785_v12 = vmax.f32 %v783_v1, %v784_v9  ;;  %v791_v13 = vrot.slane %v790_v10, 1  ;;  %v415_v43 = vmul.f32 %v949_v40, %v414_v42  ;;  %v509_v9 = vld [vmem:[#allocation9] sm:$0xff] }
 0x15b   :  { %544 = vmatpush.msrb.mxu1 %v509_v9 }
 0x15c   :  { %v792_v15 = vmax.f32 %v790_v10, %v791_v13  ;;  %v820_v16 = vsel %vm819_vm8, %v785_v12, %v818_v14  ;;  %v416_v44 = vadd.f32 %v949_v40, %v415_v43  ;;  %vm574_vm8 = vcmask 523264  }
 0x15e   :  { %v822_v17 = vsel %vm821_vm9, %v792_v15, %v820_v16  ;;  %v1345_v45 = vsel %vm417_vm10, %v949_v40, %v416_v44  ;;  %v565_v44 = vld [vmem:[%s1483_s9 + $0x18] sm:$0xff] }
 0x15f   :  { %925 = vmatmul.msk.f32.vlgmr.msrb.gmra.mxu3 %vm129_vm0, %v822_v17 }
 0x1b4   :  { %v382_v19 = vpop.f32.mrf.mxu0 }
 0x1b5   :  { %v383_v20 = vadd.f32 %v940_v18, %v382_v19 }
 0x1b7   :  { %v394_v21 = vadd.f32 %v383_v20, %v1241_v4 }
 0x1b9   :  { %v400_v22 = vsel %vm129_vm0, %v394_v21, 0.0 }
 0x1ba   :  { %401 = vadd.xlane.f32.xlu0 %v400_v22 }
 0x1bc   :  { %v385_v23 = vpop.f32.mrf.mxu0 }
 0x1bd   :  { %v386_v24 = vadd.f32 %v940_v18, %v385_v23 }
 0x1bf   :  { %v395_v25 = vadd.f32 %v386_v24, %v1245_v5 }
 0x1c1   :  { %v403_v26 = vsel %vm129_vm0, %v395_v25, 0.0 }
 0x1c2   :  { %404 = vadd.xlane.f32.xlu0 %v403_v26 }
 0x1c4   :  { %v388_v27 = vpop.f32.mrf.mxu0 }
 0x1c5   :  { %v389_v28 = vadd.f32 %v940_v18, %v388_v27  ;;  %v1373_v27 = vld [vmem:[%s1485_s11] ss:$0 sm:$0xff] }
 0x1c7   :  { %v396_v29 = vadd.f32 %v389_v28, %v1249_v6  ;;  %v569_v28 = vld [vmem:[%s1483_s9 + $0x38] sm:$0xff] }
 0x1c8   :  { %595 = vmatpush.msrb.mxu2 %v569_v28 }
 0x1c9   :  { %v406_v30 = vsel %vm129_vm0, %v396_v29, 0.0 }
 0x1ca   :  { %407 = vadd.xlane.f32.xlu1 %v406_v30 }
 0x1cc   :  { %v391_v31 = vpop.f32.mrf.mxu0 }
 0x1cd   :  { %v392_v32 = vadd.f32 %v940_v18, %v391_v31 }
 0x1cf   :  { %v397_v33 = vadd.f32 %v392_v32, %v1253_v7 }
 0x1d1   :  { %v409_v34 = vsel %vm129_vm0, %v397_v33, 0.0 }
 0x1d2   :  { %410 = vadd.xlane.f32.xlu1 %v409_v34  ;;  %v567_v34 = vld [vmem:[%s1483_s9 + $0x28] sm:$0xff] }
 0x1e2   :  { %v842_v36 = vpop.f32.mrf.mxu3 }
 0x1e3   :  { %v843_v37 = vadd.f32 %v941_v35, %v842_v36 }
 0x1e5   :  { %v846_v38 = vrot.slane %v843_v37, 4  ;;  %848 = vst.msk [vmem:[#allocation12] sm:$0xf] %vm736_vm2, %v843_v37 }
 0x1e7   :  { %849 = vst.msk [vmem:[#allocation12 + $0x4] sm:$0xf] %vm736_vm2, %v846_v38 }
 0x22d   :  { %v402_v46 = vpop.xlane.xlu0 %401 }
 0x22e   :  { %v419_v49 = vmul.f32 %v1345_v45, %v402_v46 }
 0x230   :  { %v423_v48 = vsub.f32 %v394_v21, %v419_v49  ;;  %v564_v49 = vld [vmem:[%s1483_s9 + $0x10] sm:$0xff] }
 0x232   :  { %v427_v50 = vmul.f32 %v423_v48, %v423_v48 }
 0x234   :  { %v431_v51 = vsel %vm129_vm0, %v427_v50, 0.0 }
 0x235   :  { %432 = vadd.xlane.f32.xlu2 %v431_v51  ;;  %v405_v52 = vpop.xlane.xlu0 %404 }
 0x236   :  { %v420_v53 = vmul.f32 %v1345_v45, %v405_v52  ;;  %v563_v52 = vld [vmem:[%s1483_s9 + $0x8] sm:$0xff] }
 0x238   :  { %v1350_v54 = vsub.f32 %v395_v25, %v420_v53 }
 0x23a   :  { %v428_v55 = vmul.f32 %v1350_v54, %v1350_v54 }
 0x23c   :  { %v434_v56 = vsel %vm129_vm0, %v428_v55, 0.0 }
 0x23d   :  { %435 = vadd.xlane.f32.xlu2 %v434_v56  ;;  %v408_v57 = vpop.xlane.xlu1 %407 }
 0x23e   :  { %v421_v58 = vmul.f32 %v1345_v45, %v408_v57 }
 0x240   :  { %v1356_v59 = vsub.f32 %v396_v29, %v421_v58  ;;  %v568_v29 = vld [vmem:[%s1483_s9 + $0x30] sm:$0xff] }
 0x241   :  { %596 = vmatpush.msrb.mxu2 %v568_v29 }
 0x242   :  { %v429_v60 = vmul.f32 %v1356_v59, %v1356_v59 }
 0x243   :  { %597 = vmatpush.msrb.mxu2 %v567_v34 }
 0x244   :  { %v437_v61 = vsel %vm129_vm0, %v429_v60, 0.0 }
 0x245   :  { %438 = vadd.xlane.f32.xlu0 %v437_v61  ;;  %v411_v62 = vpop.xlane.xlu1 %410  ;;  %598 = vmatpush.msrb.mxu2 %v566_v39 }
 0x246   :  { %v422_v63 = vmul.f32 %v1345_v45, %v411_v62 }
 0x247   :  { %599 = vmatpush.msrb.mxu2 %v565_v44 }
 0x248   :  { %v1362_v0 = vsub.f32 %v397_v33, %v422_v63  ;;  %v943_v33 = vld [vmem:[%s1486_s12] ss:$0 sm:$0xff] }
 0x249   :  { %600 = vmatpush.msrb.mxu2 %v564_v49 }
 0x24a   :  { %v430_v1 = vmul.f32 %v1362_v0, %v1362_v0 }
 0x24b   :  { %601 = vmatpush.msrb.mxu2 %v563_v52 }
 0x24c   :  { %v440_v2 = vsel %vm129_vm0, %v430_v1, 0.0 }
 0x24d   :  { %441 = vadd.xlane.f32.xlu1 %v440_v2 }
 0x2a8   :  { %v433_v10 = vpop.xlane.xlu2 %432 }
 0x2a9   :  { %v443_v11 = vmul.f32 %v433_v10, %v1345_v45 }
 0x2ab   :  { %v447_v12 = vadd.f32 1e-05, %v443_v11 }
 0x2ad   :  { %950 = vrsqrt.f32 %v447_v12  ;;  %vm457_vm12 = vweird.f32 %v447_v12 }
 0x2b0   :  { %v436_v13 = vpop.xlane.xlu2 %435 }
 0x2b1   :  { %v444_v14 = vmul.f32 %v436_v13, %v1345_v45 }
 0x2b3   :  { %v951_v15 = vpop.eup %950  ;;  %v448_v16 = vadd.f32 1e-05, %v444_v14  ;;  %v944_v14 = vld [vmem:[%s1482_s8] ss:$0 sm:$0xff]  ;;  %s1128_s8 = smov [#allocation12]  }
 0x2b4   :  { %v452_v17 = vmul.f32 %v951_v15, %v447_v12  ;;  %vm458_vm11 = vweird.f32 %v951_v15 }
 0x2b5   :  { %952 = vrsqrt.f32 %v448_v16  ;;  %vm459_vm13 = vmor %vm457_vm12, %vm458_vm11  ;;  %vm467_vm15 = vweird.f32 %v448_v16 }
 0x2b6   :  { %v453_v18 = vmul.f32 %v951_v15, %v452_v17 }
 0x2b8   :  { %v454_v19 = vmul.f32 0.5, %v453_v18  ;;  %v439_v20 = vpop.xlane.xlu0 %438 }
 0x2b9   :  { %v445_v21 = vmul.f32 %v439_v20, %v1345_v45 }
 0x2ba   :  { %v455_v22 = vsub.f32 1.5, %v454_v19 }
 0x2bb   :  { %v953_v23 = vpop.eup %952  ;;  %v449_v24 = vadd.f32 1e-05, %v445_v21 }
 0x2bc   :  { %v456_v25 = vmul.f32 %v951_v15, %v455_v22  ;;  %v462_v26 = vmul.f32 %v953_v23, %v448_v16  ;;  %vm468_vm14 = vweird.f32 %v953_v23 }
 0x2bd   :  { %954 = vrsqrt.f32 %v449_v24  ;;  %vm469_vm1 = vmor %vm467_vm15, %vm468_vm14  ;;  %vm477_vm3 = vweird.f32 %v449_v24 }
 0x2be   :  { %v460_v30 = vsel %vm459_vm13, %v951_v15, %v456_v25  ;;  %v463_v31 = vmul.f32 %v953_v23, %v462_v26  ;;  %v945_v26 = vld [vmem:[%s1484_s10] ss:$0 sm:$0xff]  ;;  %s867_s10 = sshll.u32 %s1128_s8, 4  ;;  %s868_s10 = int_to_ptr.vmem [resolvable:$true] %s867_s10 }
 0x2bf   :  { %v491_v32 = vmul.f32 %v460_v30, %v423_v48  ;;  %875 = dma.vmem_to_hbm [thread:$0]  %s868_s10, 128, %s870_s5, [#allocation13], %s1129_s7, %s1129_s7, %s1130_s25  }
 0x2c0   :  { %v464_v35 = vmul.f32 0.5, %v463_v31  ;;  %v442_v36 = vpop.xlane.xlu1 %441 }
 0x2c1   :  { %v446_v37 = vmul.f32 %v442_v36, %v1345_v45  ;;  %v498_v38 = vmul.f32 %v1373_v27, %v491_v32 }
 0x2c2   :  { %v465_v40 = vsub.f32 1.5, %v464_v35 }
 0x2c3   :  { %v955_v41 = vpop.eup %954  ;;  %v450_v42 = vadd.f32 1e-05, %v446_v37  ;;  %v505_v43 = vadd.f32 %v943_v33, %v498_v38 }
 0x2c4   :  { %v466_v46 = vmul.f32 %v953_v23, %v465_v40  ;;  %v472_v47 = vmul.f32 %v955_v41, %v449_v24  ;;  %vm478_vm2 = vweird.f32 %v955_v41 }
 0x2c5   :  { %956 = vrsqrt.f32 %v450_v42  ;;  %917 = vmatmul.msk.f32.vlgmr.msrb.gmra.mxu1 %vm129_vm0, %v505_v43  ;;  %vm479_vm4 = vmor %vm477_vm3, %vm478_vm2  ;;  %vm487_vm6 = vweird.f32 %v450_v42 }
 0x2c6   :  { %v470_v48 = vsel %vm469_vm1, %v953_v23, %v466_v46  ;;  %v473_v50 = vmul.f32 %v955_v41, %v472_v47 }
 0x2c7   :  { %v492_v51 = vmul.f32 %v470_v48, %v1350_v54 }
 0x2c8   :  { %v474_v53 = vmul.f32 0.5, %v473_v50 }
 0x2c9   :  { %v499_v55 = vmul.f32 %v1373_v27, %v492_v51 }
 0x2ca   :  { %v475_v56 = vsub.f32 1.5, %v474_v53 }
 0x2cb   :  { %v957_v57 = vpop.eup %956  ;;  %v506_v58 = vadd.f32 %v943_v33, %v499_v55 }
 0x2cc   :  { %v476_v60 = vmul.f32 %v955_v41, %v475_v56  ;;  %v482_v61 = vmul.f32 %v957_v57, %v450_v42  ;;  %vm488_vm5 = vweird.f32 %v957_v57 }
 0x2cd   :  { %918 = vmatmul.msk.f32.gmra.mxu1 %vm129_vm0, %v506_v58  ;;  %vm489_vm7 = vmor %vm487_vm6, %vm488_vm5 }
 0x2ce   :  { %v480_v54 = vsel %vm479_vm4, %v955_v41, %v476_v60  ;;  %v483_v62 = vmul.f32 %v957_v57, %v482_v61 }
 0x2cf   :  { %v493_v63 = vmul.f32 %v480_v54, %v1356_v59  ;;  %v562_v59 = vld [vmem:[%s1483_s9] sm:$0xff] }
 0x2d0   :  { %v484_v1 = vmul.f32 0.5, %v483_v62  ;;  %602 = vmatpush.msrb.mxu2 %v562_v59 }
 0x2d1   :  { %v500_v2 = vmul.f32 %v1373_v27, %v493_v63 }
 0x2d2   :  { %v485_v3 = vsub.f32 1.5, %v484_v1 }
 0x2d3   :  { %v507_v8 = vadd.f32 %v943_v33, %v500_v2 }
 0x2d4   :  { %v486_v9 = vmul.f32 %v957_v57, %v485_v3 }
 0x2d5   :  { %919 = vmatmul.msk.f32.gmra.mxu1 %vm129_vm0, %v507_v8 }
 0x2d6   :  { %v490_v10 = vsel %vm489_vm7, %v957_v57, %v486_v9 }
 0x2d7   :  { %v494_v11 = vmul.f32 %v490_v10, %v1362_v0 }
 0x2d9   :  { %v501_v12 = vmul.f32 %v1373_v27, %v494_v11 }
 0x2db   :  { %v508_v13 = vadd.f32 %v943_v33, %v501_v12 }
 0x2dd   :  { %920 = vmatmul.msk.f32.gmra.mxu1 %vm129_vm0, %v508_v13 }
 0x342   :  { %v546_v15 = vpop.f32.mrf.mxu1 }
 0x343   :  { %v547_v16 = vadd.f32 %v944_v14, %v546_v15 }
 0x345   :  { %v558_v17 = vmax.f32 %v547_v16, 0.0 }
 0x347   :  { %921 = vmatmul.msk.f32.vlgmr.msrb.gmra.mxu2 %vm574_vm8, %v558_v17 }
 0x34a   :  { %v549_v0 = vpop.f32.mrf.mxu1 }
 0x34b   :  { %v550_v18 = vadd.f32 %v944_v14, %v549_v0  ;;  %v946_v0 = vld [vmem:[%s1487_s13] ss:$0 sm:$0xff]  ;;  %s1131_s13 = smov [#allocation11]  }
 0x34d   :  { %v559_v19 = vmax.f32 %v550_v18, 0.0 }
 0x34f   :  { %922 = vmatmul.msk.f32.gmra.mxu2 %vm574_vm8, %v559_v19 }
 0x352   :  { %v552_v20 = vpop.f32.mrf.mxu1 }
 0x353   :  { %v553_v21 = vadd.f32 %v944_v14, %v552_v20  ;;  %v947_v20 = vld [vmem:[%s1488_s14] ss:$0 sm:$0xff]  ;;  %s854_s14 = sshll.u32 %s1131_s13, 4  ;;  %s855_s14 = int_to_ptr.vmem [resolvable:$true] %s854_s14 }
 0x355   :  { %v560_v22 = vmax.f32 %v553_v21, 0.0 }
 0x357   :  { %923 = vmatmul.msk.f32.gmra.mxu2 %vm574_vm8, %v560_v22 }
 0x35a   :  { %v555_v23 = vpop.f32.mrf.mxu1 }
 0x35b   :  { %v556_v24 = vadd.f32 %v944_v14, %v555_v23 }
 0x35d   :  { %v561_v25 = vmax.f32 %v556_v24, 0.0 }
 0x35f   :  { %924 = vmatmul.msk.f32.gmra.mxu2 %vm574_vm8, %v561_v25 }
 0x3ca   :  { %v604_v27 = vpop.f32.mrf.mxu2 }
 0x3cb   :  { %v605_v28 = vadd.f32 %v945_v26, %v604_v27 }
 0x3cd   :  { %v616_v29 = vadd.f32 %v605_v28, %v1241_v4 }
 0x3cf   :  { %v622_v30 = vsel %vm129_vm0, %v616_v29, 0.0 }
 0x3d0   :  { %623 = vadd.xlane.f32.xlu2 %v622_v30 }
 0x3d2   :  { %v607_v31 = vpop.f32.mrf.mxu2 }
 0x3d3   :  { %v608_v32 = vadd.f32 %v945_v26, %v607_v31 }
 0x3d5   :  { %v617_v33 = vadd.f32 %v608_v32, %v1245_v5 }
 0x3d7   :  { %v625_v34 = vsel %vm129_vm0, %v617_v33, 0.0 }
 0x3d8   :  { %626 = vadd.xlane.f32.xlu0 %v625_v34 }
 0x3da   :  { %v610_v35 = vpop.f32.mrf.mxu2 }
 0x3db   :  { %v611_v36 = vadd.f32 %v945_v26, %v610_v35 }
 0x3dd   :  { %v618_v37 = vadd.f32 %v611_v36, %v1249_v6 }
 0x3df   :  { %v628_v38 = vsel %vm129_vm0, %v618_v37, 0.0 }
 0x3e0   :  { %629 = vadd.xlane.f32.xlu1 %v628_v38 }
 0x3e2   :  { %v613_v39 = vpop.f32.mrf.mxu2 }
 0x3e3   :  { %v614_v40 = vadd.f32 %v945_v26, %v613_v39 }
 0x3e5   :  { %v619_v4 = vadd.f32 %v614_v40, %v1253_v7 }
 0x3e7   :  { %v631_v41 = vsel %vm129_vm0, %v619_v4, 0.0 }
 0x3e8   :  { %632 = vadd.xlane.f32.xlu2 %v631_v41 }
 0x443   :  { %v624_v42 = vpop.xlane.xlu2 %623 }
 0x444   :  { %v634_v5 = vmul.f32 %v624_v42, %v1345_v45 }
 0x446   :  { %v638_v43 = vsub.f32 %v616_v29, %v634_v5 }
 0x448   :  { %v642_v44 = vmul.f32 %v638_v43, %v638_v43 }
 0x44a   :  { %v646_v46 = vsel %vm129_vm0, %v642_v44, 0.0 }
 0x44b   :  { %v627_v47 = vpop.xlane.xlu0 %626  ;;  %647 = vadd.xlane.f32.xlu0 %v646_v46 }
 0x44c   :  { %v635_v6 = vmul.f32 %v627_v47, %v1345_v45 }
 0x44e   :  { %v1431_v49 = vsub.f32 %v617_v33, %v635_v6 }
 0x450   :  { %v643_v48 = vmul.f32 %v1431_v49, %v1431_v49 }
 0x452   :  { %v649_v7 = vsel %vm129_vm0, %v643_v48, 0.0 }
 0x453   :  { %650 = vadd.xlane.f32.xlu1 %v649_v7  ;;  %v630_v50 = vpop.xlane.xlu1 %629 }
 0x454   :  { %v636_v51 = vmul.f32 %v630_v50, %v1345_v45 }
 0x456   :  { %v1437_v52 = vsub.f32 %v618_v37, %v636_v51 }
 0x458   :  { %v644_v53 = vmul.f32 %v1437_v52, %v1437_v52 }
 0x45a   :  { %v652_v55 = vsel %vm129_vm0, %v644_v53, 0.0 }
 0x45b   :  { %v633_v56 = vpop.xlane.xlu2 %632  ;;  %653 = vadd.xlane.f32.xlu2 %v652_v55 }
 0x45c   :  { %v637_v57 = vmul.f32 %v633_v56, %v1345_v45 }
 0x45e   :  { %v1443_v58 = vsub.f32 %v619_v4, %v637_v57 }
 0x460   :  { %v645_v60 = vmul.f32 %v1443_v58, %v1443_v58 }
 0x462   :  { %v655_v61 = vsel %vm129_vm0, %v645_v60, 0.0 }
 0x463   :  { %656 = vadd.xlane.f32.xlu0 %v655_v61 }
 0x4be   :  { %v648_v54 = vpop.xlane.xlu0 %647 }
 0x4bf   :  { %v658_v62 = vmul.f32 %v648_v54, %v1345_v45 }
 0x4c1   :  { %v662_v63 = vadd.f32 1e-05, %v658_v62 }
 0x4c3   :  { %958 = vrsqrt.f32 %v662_v63  ;;  %vm672_vm10 = vweird.f32 %v662_v63 }
 0x4c6   :  { %v651_v1 = vpop.xlane.xlu1 %650 }
 0x4c7   :  { %v659_v2 = vmul.f32 %v651_v1, %v1345_v45 }
 0x4c9   :  { %v959_v3 = vpop.eup %958  ;;  %v663_v8 = vadd.f32 1e-05, %v659_v2 }
 0x4ca   :  { %v667_v9 = vmul.f32 %v959_v3, %v662_v63  ;;  %vm673_vm9 = vweird.f32 %v959_v3 }
 0x4cb   :  { %960 = vrsqrt.f32 %v663_v8  ;;  %vm674_vm11 = vmor %vm672_vm10, %vm673_vm9  ;;  %vm682_vm13 = vweird.f32 %v663_v8 }
 0x4cc   :  { %v668_v10 = vmul.f32 %v959_v3, %v667_v9 }
 0x4ce   :  { %v669_v11 = vmul.f32 0.5, %v668_v10  ;;  %v654_v12 = vpop.xlane.xlu2 %653 }
 0x4cf   :  { %v660_v13 = vmul.f32 %v654_v12, %v1345_v45 }
 0x4d0   :  { %v670_v59 = vsub.f32 1.5, %v669_v11 }
 0x4d1   :  { %v961_v14 = vpop.eup %960  ;;  %v664_v15 = vadd.f32 1e-05, %v660_v13 }
 0x4d2   :  { %v671_v16 = vmul.f32 %v959_v3, %v670_v59  ;;  %v677_v17 = vmul.f32 %v961_v14, %v663_v8  ;;  %vm683_vm12 = vweird.f32 %v961_v14 }
 0x4d3   :  { %962 = vrsqrt.f32 %v664_v15  ;;  %vm684_vm14 = vmor %vm682_vm13, %vm683_vm12  ;;  %vm692_vm1 = vweird.f32 %v664_v15 }
 0x4d4   :  { %v675_v18 = vsel %vm674_vm11, %v959_v3, %v671_v16  ;;  %v678_v19 = vmul.f32 %v961_v14, %v677_v17 }
 0x4d5   :  { %v706_v21 = vmul.f32 %v675_v18, %v638_v43 }
 0x4d6   :  { %v679_v22 = vmul.f32 0.5, %v678_v19  ;;  %v657_v23 = vpop.xlane.xlu0 %656 }
 0x4d7   :  { %v713_v24 = vmul.f32 %v946_v0, %v706_v21  ;;  %v661_v25 = vmul.f32 %v657_v23, %v1345_v45 }
 0x4d8   :  { %v680_v26 = vsub.f32 1.5, %v679_v22 }
 0x4d9   :  { %v963_v27 = vpop.eup %962  ;;  %v720_v28 = vadd.f32 %v947_v20, %v713_v24  ;;  %v665_v29 = vadd.f32 1e-05, %v661_v25 }
 0x4da   :  { %v681_v30 = vmul.f32 %v961_v14, %v680_v26  ;;  %v687_v31 = vmul.f32 %v963_v27, %v664_v15  ;;  %vm693_vm15 = vweird.f32 %v963_v27 }
 0x4db   :  { %724 = vst.msk [vmem:[#allocation11] sm:$0xff] %vm129_vm0, %v720_v28  ;;  %964 = vrsqrt.f32 %v665_v29  ;;  %vm694_vm2 = vmor %vm692_vm1, %vm693_vm15  ;;  %vm702_vm4 = vweird.f32 %v665_v29 }
 0x4dc   :  { %v685_v32 = vsel %vm684_vm14, %v961_v14, %v681_v30  ;;  %v688_v33 = vmul.f32 %v963_v27, %v687_v31 }
 0x4dd   :  { %v707_v34 = vmul.f32 %v685_v32, %v1431_v49 }
 0x4de   :  { %v689_v35 = vmul.f32 0.5, %v688_v33 }
 0x4df   :  { %v714_v36 = vmul.f32 %v946_v0, %v707_v34 }
 0x4e0   :  { %v690_v37 = vsub.f32 1.5, %v689_v35 }
 0x4e1   :  { %v965_v45 = vpop.eup %964  ;;  %v721_v38 = vadd.f32 %v947_v20, %v714_v36 }
 0x4e2   :  { %v691_v39 = vmul.f32 %v963_v27, %v690_v37  ;;  %v697_v40 = vmul.f32 %v965_v45, %v665_v29  ;;  %vm703_vm3 = vweird.f32 %v965_v45 }
 0x4e3   :  { %725 = vst.msk [vmem:[#allocation11 + $0x8] sm:$0xff] %vm129_vm0, %v721_v38  ;;  %vm704_vm5 = vmor %vm702_vm4, %vm703_vm3 }
 0x4e4   :  { %v695_v4 = vsel %vm694_vm2, %v963_v27, %v691_v39  ;;  %v698_v41 = vmul.f32 %v965_v45, %v697_v40 }
 0x4e5   :  { %v708_v42 = vmul.f32 %v695_v4, %v1437_v52 }
 0x4e6   :  { %v699_v5 = vmul.f32 0.5, %v698_v41 }
 0x4e7   :  { %v715_v43 = vmul.f32 %v946_v0, %v708_v42 }
 0x4e8   :  { %v700_v44 = vsub.f32 1.5, %v699_v5 }
 0x4e9   :  { %v722_v46 = vadd.f32 %v947_v20, %v715_v43 }
 0x4ea   :  { %v701_v47 = vmul.f32 %v965_v45, %v700_v44 }
 0x4eb   :  { %726 = vst.msk [vmem:[#allocation11 + $0x10] sm:$0xff] %vm129_vm0, %v722_v46 }
 0x4ec   :  { %v705_v6 = vsel %vm704_vm5, %v965_v45, %v701_v47 }
 0x4ed   :  { %v709_v49 = vmul.f32 %v705_v6, %v1443_v58 }
 0x4ef   :  { %v716_v48 = vmul.f32 %v946_v0, %v709_v49 }
 0x4f1   :  { %v723_v7 = vadd.f32 %v947_v20, %v716_v48 }
 0x4f3   :  { %727 = vst.msk [vmem:[#allocation11 + $0x18] sm:$0xff] %vm129_vm0, %v723_v7 }
 0x4f4   :  { %862 = dma.vmem_to_hbm [thread:$0]  %s855_s14, 512, %s857_s19, [#allocation5], %s1121_s30, %s1121_s30, %s1122_s0  }
 0x4f5   :  { %1116 = dma.done.wait [#allocation5], 512  }
 0x4f6   :  { %1117 = vsyncadd [#allocation5], 4294966784 }
 0x4f7   :  { %1118 = dma.done.wait [#allocation13], 128  }
 0x4f8   :  { %1119 = vsyncadd [#allocation13], 4294967168 }
 0x4f9   :  { %884 = vsyncpa [#allocation4], 1 }
 0x4fa   :  { %885 = vsyncpa [#allocation7], 1 }
 0x4fb   :  { %886 = vsyncpa [#allocation10], 1 }
 0x4fc   :  { %887 = vsyncpa [#allocation5], 1 }
 0x4fd   :  { %888 = vsyncpa [#allocation13], 1 }

</bundles_post_ra>
